<compile_context>
chip_gen: v6e
topology: v6e:2x2x1
jax: 0.10.0
libtpu: 0.0.40
codegen_flags: <defaults>
</compile_context>

<pallas_src>
import jax
import jax.numpy as jnp
import numpy as np
from jax import lax
from jax.experimental import pallas as pl
from jax.experimental.pallas import tpu as pltpu


def _residual_block_kernel(x_ref, w1_ref, b1_ref, w2_ref, b2_ref,
                           pw1_ref, fb1_ref, fw2_ref, fb2_ref, o_ref):
    Bt, H, WC = x_ref.shape            # lane-dense activations: minor dim = W*C
    Cr = pw1_ref.shape[0]              # SE hidden width (C // reduction)
    M = Bt * H

    x3 = x_ref[...]                                        # (Bt, H, W*C) f32

    # Row masks for the H-shifted conv taps (hoisted: shared by both convs).
    hmod = lax.broadcasted_iota(jnp.int32, (M, 1), 0) % H
    top = hmod == 0                    # output row h==0   gets no kh=0 (h-1) tap
    bot = hmod == H - 1                # output row h==H-1 gets no kh=2 (h+1) tap

    def conv_bn(xb, w_ref, b_ref):
        """3x3 'same' conv + folded BN (scale folded into weights, bias added here).

        Three bf16 MXU matmuls over the full aligned (M, W*C) tile; H taps are
        applied by rolling the results and masking wrapped rows -- no padded
        scratch, no misaligned slice/reshape relayouts."""
        y0 = jnp.dot(xb, w_ref[0], preferred_element_type=jnp.float32)
        y1 = jnp.dot(xb, w_ref[1], preferred_element_type=jnp.float32)
        y2 = jnp.dot(xb, w_ref[2], preferred_element_type=jnp.float32)
        up = jnp.where(top, 0.0, pltpu.roll(y0, shift=1, axis=0))       # y0[h-1]
        dn = jnp.where(bot, 0.0, pltpu.roll(y2, shift=M - 1, axis=0))   # y2[h+1]
        return y1 + up + dn + b_ref[...]                   # (M, W*C) f32

    # conv1 + BN1 + ReLU, then conv2 + BN2 (no ReLU yet, as in the PyTorch module)
    xb1 = x3.reshape(M, WC).astype(jnp.bfloat16)           # cast once per conv
    out1 = jnp.maximum(conv_bn(xb1, w1_ref, b1_ref), 0.0)
    out2 = conv_bn(out1.astype(jnp.bfloat16), w2_ref, b2_ref)
    out2_3d = out2.reshape(Bt, H, WC)

    # ---- SE squeeze + fc1: the global-average-pool and fc1 are pre-composed into
    # pw1 (Cr, W*C) on the host, so only an H-sum and Cr lane-reduces remain. ----
    row_sum = jnp.sum(out2_3d, axis=1)                     # (Bt, W*C)
    h_cols = []
    for j in range(Cr):                                    # fc1 -> ReLU, per hidden unit
        hj = jnp.sum(row_sum * pw1_ref[j:j + 1, :], axis=-1, keepdims=True)  # (Bt, 1)
        h_cols.append(jnp.maximum(hj + fb1_ref[:, j:j + 1], 0.0))

    # ---- SE fc2 (+ sigmoid), built directly in the lane-dense layout ----
    logits = h_cols[0] * fw2_ref[0:1, :]
    for j in range(1, Cr):
        logits = logits + h_cols[j] * fw2_ref[j:j + 1, :]
    excite = jax.nn.sigmoid(logits + fb2_ref[...])         # (Bt, W*C)

    # ---- SE scale + residual add + final ReLU (dense, unmasked store) ----
    o_ref[...] = jnp.maximum(out2_3d * excite[:, None, :] + x3, 0.0)


def _pick_batch_tile(B):
    """grid=1 on single-TC chips (v5e/v6e); 2 parallel steps on dual-TC v7x."""
    try:
        kind = jax.devices()[0].device_kind.lower()
    except Exception:
        kind = ""
    if ("v7" in kind or "7x" in kind) and B % 2 == 0:
        return B // 2
    return B


def residual_block_pallas(x_nchw, kparams, *, batch_tile=None):
    """x_nchw: (B, C, H, W) float32.  kparams: dict from fold_params()."""
    B, C, H, W = x_nchw.shape
    WC = W * C
    Cr = kparams["pw1"].shape[0]
    Bt = _pick_batch_tile(B) if batch_tile is None else min(batch_tile, B)
    assert B % Bt == 0, "batch must be divisible by the batch tile"

    # NCHW -> lane-dense (B, H, W*C)
    x = jnp.transpose(x_nchw, (0, 2, 3, 1)).astype(jnp.float32).reshape(B, H, WC)

    out = pl.pallas_call(
        _residual_block_kernel,
        out_shape=jax.ShapeDtypeStruct((B, H, WC), jnp.float32),
        grid_spec=pltpu.PrefetchScalarGridSpec(
            num_scalar_prefetch=0,
            grid=(B // Bt,),
            in_specs=[
                pl.BlockSpec((Bt, H, WC), lambda b: (b, 0, 0)),   # x (lane-dense)
                pl.BlockSpec((3, WC, WC), lambda b: (0, 0, 0)),   # conv1 Toeplitz*BN1 (bf16)
                pl.BlockSpec((1, WC), lambda b: (0, 0)),          # folded bias 1 (lane-tiled)
                pl.BlockSpec((3, WC, WC), lambda b: (0, 0, 0)),   # conv2 Toeplitz*BN2 (bf16)
                pl.BlockSpec((1, WC), lambda b: (0, 0)),          # folded bias 2
                pl.BlockSpec((Cr, WC), lambda b: (0, 0)),         # SE pool+fc1 folded weight
                pl.BlockSpec((1, Cr), lambda b: (0, 0)),          # SE fc1 bias
                pl.BlockSpec((Cr, WC), lambda b: (0, 0)),         # SE fc2 weight (lane-tiled)
                pl.BlockSpec((1, WC), lambda b: (0, 0)),          # SE fc2 bias   (lane-tiled)
            ],
            out_specs=pl.BlockSpec((Bt, H, WC), lambda b: (b, 0, 0)),
        ),
        compiler_params=pltpu.CompilerParams(dimension_semantics=("parallel",)),
    )(x, kparams["w1"], kparams["b1"], kparams["w2"], kparams["b2"],
      kparams["pw1"], kparams["fb1"], kparams["fw2"], kparams["fb2"])

    return jnp.transpose(out.reshape(B, H, W, C), (0, 3, 1, 2))   # back to NCHW


def _block_toeplitz(w_oihw, W, scale):
    """(Cout, Cin, 3, 3) torch conv weight * per-Cout BN scale -> (3, W*Cin, W*Cout) bf16.

    T[kh, wi*Cin + ci, wo*Cout + co] = w[co, ci, kh, wi - wo + 1] * scale[co]
    (0 elsewhere), so one lane-dense image row (lanes = (w, c)) times T[kh] performs
    the kw taps, the channel mixing and the BN scaling in a single MXU matmul.
    Width zero-padding is implicit; the scale multiply happens in f32 before the
    bf16 cast."""
    w_np = (np.asarray(w_oihw, np.float32)
            * np.asarray(scale, np.float32)[:, None, None, None])
    C = w_np.shape[0]
    T = np.zeros((3, W * C, W * C), np.float32)
    for kh in range(3):
        for kw in range(3):
            blk = w_np[:, :, kh, kw].T                      # (ci, co)
            for wo in range(W):
                wi = wo + kw - 1
                if 0 <= wi < W:
                    T[kh, wi * C:(wi + 1) * C, wo * C:(wo + 1) * C] = blk
    return jnp.asarray(T, jnp.bfloat16)


def fold_params(raw, W, H, eps=1e-5):
    """Torch-layout params -> kernel-ready tensors (BN folded into weights/bias,
    SE pool+fc1 composed, everything lane-tiled for the (W*C) minor dim)."""
    C = raw["conv1_w"].shape[0]
    s1 = raw["bn1_g"] / jnp.sqrt(raw["bn1_v"] + eps)
    b1 = raw["bn1_b"] + s1 * (raw["conv1_b"] - raw["bn1_m"])
    s2 = raw["bn2_g"] / jnp.sqrt(raw["bn2_v"] + eps)
    b2 = raw["bn2_b"] + s2 * (raw["conv2_b"] - raw["bn2_m"])

    def tile_w(v):                                          # (C,) -> (1, W*C), lane-tiled
        return jnp.tile(v, W).reshape(1, W * C).astype(jnp.float32)

    return {
        "w1": _block_toeplitz(raw["conv1_w"], W, s1),       # BN1 scale folded in
        "w2": _block_toeplitz(raw["conv2_w"], W, s2),       # BN2 scale folded in
        "b1": tile_w(b1), "b2": tile_w(b2),
        # SE: global-average-pool (1/(H*W)) composed with fc1 and width-tiled
        "pw1": (jnp.tile(raw["fc1_w"], (1, W)) / float(H * W)).astype(jnp.float32),
        "fb1": raw["fc1_b"].reshape(1, -1).astype(jnp.float32),
        "fw2": jnp.tile(raw["fc2_w"].T, (1, W)).astype(jnp.float32),  # (Cr, W*C)
        "fb2": tile_w(raw["fc2_b"]),
    }


def init_raw_params(key, C, reduction=8):
    """Deterministic parameter init with PyTorch-layout shapes."""
    Cr = C // reduction
    ks = jax.random.split(key, 16)

    def rnd(k, shape, scale=0.1):
        return jax.random.normal(k, shape, jnp.float32) * scale

    return {
        "conv1_w": rnd(ks[0], (C, C, 3, 3)), "conv1_b": rnd(ks[1], (C,)),
        "conv2_w": rnd(ks[2], (C, C, 3, 3)), "conv2_b": rnd(ks[3], (C,)),
        "bn1_g": 1.0 + rnd(ks[4], (C,)), "bn1_b": rnd(ks[5], (C,)),
        "bn1_m": rnd(ks[6], (C,)), "bn1_v": jnp.abs(rnd(ks[7], (C,))) + 1.0,
        "bn2_g": 1.0 + rnd(ks[8], (C,)), "bn2_b": rnd(ks[9], (C,)),
        "bn2_m": rnd(ks[10], (C,)), "bn2_v": jnp.abs(rnd(ks[11], (C,))) + 1.0,
        "fc1_w": rnd(ks[12], (Cr, C)), "fc1_b": rnd(ks[13], (Cr,)),   # torch Linear (out, in)
        "fc2_w": rnd(ks[14], (C, Cr)), "fc2_b": rnd(ks[15], (C,)),
    }


def residual_block_ref(x_nchw, raw, eps=1e-5):
    """Pure-JAX reference (eval-mode BN), mirrors the PyTorch forward."""
    x = x_nchw.astype(jnp.float32)

    def conv(x, w, b):
        y = jax.lax.conv_general_dilated(
            x, w, window_strides=(1, 1), padding="SAME",
            dimension_numbers=("NCHW", "OIHW", "NCHW"))
        return y + b[None, :, None, None]

    def bn(x, g, be, m, v):
        return ((x - m[None, :, None, None]) / jnp.sqrt(v[None, :, None, None] + eps)
                * g[None, :, None, None] + be[None, :, None, None])

    out = jax.nn.relu(bn(conv(x, raw["conv1_w"], raw["conv1_b"]),
                         raw["bn1_g"], raw["bn1_b"], raw["bn1_m"], raw["bn1_v"]))
    out = bn(conv(out, raw["conv2_w"], raw["conv2_b"]),
             raw["bn2_g"], raw["bn2_b"], raw["bn2_m"], raw["bn2_v"])
    sq = jnp.mean(out, axis=(2, 3))                         # (B, C)
    h = jax.nn.relu(sq @ raw["fc1_w"].T + raw["fc1_b"])
    ex = jax.nn.sigmoid(h @ raw["fc2_w"].T + raw["fc2_b"])
    out = out * ex[:, :, None, None]
    return jax.nn.relu(out + x)


if __name__ == "__main__":
    # 8x8 board, C divisible by the SE reduction (8), W*C = 128 (lane-dense).
    # batch_tile auto-picks grid=1 on single-TC chips and grid=2 on dual-TC v7x.
    B, C, H, W = 8, 16, 8, 8
    key = jax.random.PRNGKey(0)
    kx, kp = jax.random.split(key)
    x = jax.random.normal(kx, (B, C, H, W), jnp.float32)

    raw = init_raw_params(kp, C)
    kparams = fold_params(raw, W, H)

    out = jax.block_until_ready(residual_block_pallas(x, kparams))
    ref = jax.block_until_ready(residual_block_ref(x, raw))

    # bf16 matmul operands (with f32 accumulation) -> slightly looser tolerance.
    np.testing.assert_allclose(np.asarray(out), np.asarray(ref), atol=5e-2, rtol=5e-2)
    print("KERNEL_OK")
</pallas_src>

<mosaic_0001>
module attributes {stable_mosaic.version = 11 : i64} {
  func.func @_residual_block_kernel(%arg0: i32, %arg1: memref<8x8x128xf32, #tpu.memory_space<vmem>>, %arg2: memref<3x128x128xbf16, #tpu.memory_space<vmem>>, %arg3: memref<1x128xf32, #tpu.memory_space<vmem>>, %arg4: memref<3x128x128xbf16, #tpu.memory_space<vmem>>, %arg5: memref<1x128xf32, #tpu.memory_space<vmem>>, %arg6: memref<2x128xf32, #tpu.memory_space<vmem>>, %arg7: memref<1x2xf32, #tpu.memory_space<vmem>>, %arg8: memref<2x128xf32, #tpu.memory_space<vmem>>, %arg9: memref<1x128xf32, #tpu.memory_space<vmem>>, %arg10: memref<8x8x128xf32, #tpu.memory_space<vmem>>) attributes {dimension_semantics = [#tpu.dimension_semantics<parallel>], iteration_bounds = array<i64: 1>, scalar_prefetch = 0 : i64, scratch_operands = 0 : i64, tpu.core_type = #tpu.core_type<tc>, window_params = [{transform_indices = @transform_0, window_bounds = array<i64: 8, 8, 128>}, {pipeline_mode = #tpu.pipeline_mode<synchronous>, transform_indices = @transform_1, window_bounds = array<i64: 3, 128, 128>}, {pipeline_mode = #tpu.pipeline_mode<synchronous>, transform_indices = @transform_2, window_bounds = array<i64: 1, 128>}, {pipeline_mode = #tpu.pipeline_mode<synchronous>, transform_indices = @transform_3, window_bounds = array<i64: 3, 128, 128>}, {pipeline_mode = #tpu.pipeline_mode<synchronous>, transform_indices = @transform_4, window_bounds = array<i64: 1, 128>}, {pipeline_mode = #tpu.pipeline_mode<synchronous>, transform_indices = @transform_5, window_bounds = array<i64: 2, 128>}, {pipeline_mode = #tpu.pipeline_mode<synchronous>, transform_indices = @transform_6, window_bounds = array<i64: 1, 2>}, {pipeline_mode = #tpu.pipeline_mode<synchronous>, transform_indices = @transform_7, window_bounds = array<i64: 2, 128>}, {pipeline_mode = #tpu.pipeline_mode<synchronous>, transform_indices = @transform_8, window_bounds = array<i64: 1, 128>}, {transform_indices = @transform_9, window_bounds = array<i64: 8, 8, 128>}]} {
    %c0 = arith.constant 0 : index
    %c0_0 = arith.constant 0 : index
    %c0_1 = arith.constant 0 : index
    %0 = vector.load %arg1[%c0, %c0_0, %c0_1] : memref<8x8x128xf32, #tpu.memory_space<vmem>>, vector<8x8x128xf32>
    %1 = tpu.iota {dimensions = array<i32: 0>} : vector<64x1xi32>
    %c8_i32 = arith.constant 8 : i32
    %c0_i32 = arith.constant 0 : i32
    %2 = arith.cmpi eq, %c8_i32, %c0_i32 : i32
    %c1_i32 = arith.constant 1 : i32
    %3 = arith.select %2, %c1_i32, %c8_i32 : i32
    %4 = vector.broadcast %3 : i32 to vector<64x1xi32>
    %5 = arith.remsi %1, %4 : vector<64x1xi32>
    %c0_i32_2 = arith.constant 0 : i32
    %6 = vector.broadcast %c0_i32_2 : i32 to vector<64x1xi32>
    %7 = arith.cmpi ne, %5, %6 : vector<64x1xi32>
    %c0_i32_3 = arith.constant 0 : i32
    %8 = vector.broadcast %c0_i32_3 : i32 to vector<64x1xi32>
    %9 = arith.cmpi slt, %5, %8 : vector<64x1xi32>
    %c0_i32_4 = arith.constant 0 : i32
    %10 = arith.cmpi slt, %3, %c0_i32_4 : i32
    %11 = vector.broadcast %10 : i1 to vector<64x1xi1>
    %12 = vector.broadcast %11 : vector<64x1xi1> to vector<64x1xi1>
    %13 = arith.xori %9, %12 : vector<64x1xi1>
    %14 = arith.andi %13, %7 : vector<64x1xi1>
    %15 = vector.broadcast %3 : i32 to vector<64x1xi32>
    %16 = arith.addi %5, %15 : vector<64x1xi32>
    %17 = arith.select %14, %16, %5 : vector<64x1xi1>, vector<64x1xi32>
    %c0_i32_5 = arith.constant 0 : i32
    %18 = vector.broadcast %c0_i32_5 : i32 to vector<64x1xi32>
    %19 = arith.cmpi eq, %17, %18 : vector<64x1xi32>
    %c7_i32 = arith.constant 7 : i32
    %20 = vector.broadcast %c7_i32 : i32 to vector<64x1xi32>
    %21 = arith.cmpi eq, %17, %20 : vector<64x1xi32>
    %22 = vector.shape_cast %0 : vector<8x8x128xf32> to vector<64x128xf32>
    %23 = arith.truncf %22 : vector<64x128xf32> to vector<64x128xbf16>
    %c0_6 = arith.constant 0 : index
    %c0_7 = arith.constant 0 : index
    %c0_8 = arith.constant 0 : index
    %24 = vector.load %arg2[%c0_6, %c0_7, %c0_8] : memref<3x128x128xbf16, #tpu.memory_space<vmem>>, vector<1x128x128xbf16>
    %25 = vector.shape_cast %24 : vector<1x128x128xbf16> to vector<128x128xbf16>
    %cst = arith.constant dense<0.000000e+00> : vector<64x128xf32>
    %26 = tpu.matmul %23, %25, %cst {dimension_numbers = #tpu.dot_dimension_numbers<[1], [0], [0], [1], [0, 0, 1, 1], [], []>} : vector<64x128xbf16>, vector<128x128xbf16>, vector<64x128xf32> -> vector<64x128xf32>
    %c1 = arith.constant 1 : index
    %c0_9 = arith.constant 0 : index
    %c0_10 = arith.constant 0 : index
    %27 = vector.load %arg2[%c1, %c0_9, %c0_10] : memref<3x128x128xbf16, #tpu.memory_space<vmem>>, vector<1x128x128xbf16>
    %28 = vector.shape_cast %27 : vector<1x128x128xbf16> to vector<128x128xbf16>
    %cst_11 = arith.constant dense<0.000000e+00> : vector<64x128xf32>
    %29 = tpu.matmul %23, %28, %cst_11 {dimension_numbers = #tpu.dot_dimension_numbers<[1], [0], [0], [1], [0, 0, 1, 1], [], []>} : vector<64x128xbf16>, vector<128x128xbf16>, vector<64x128xf32> -> vector<64x128xf32>
    %c2 = arith.constant 2 : index
    %c0_12 = arith.constant 0 : index
    %c0_13 = arith.constant 0 : index
    %30 = vector.load %arg2[%c2, %c0_12, %c0_13] : memref<3x128x128xbf16, #tpu.memory_space<vmem>>, vector<1x128x128xbf16>
    %31 = vector.shape_cast %30 : vector<1x128x128xbf16> to vector<128x128xbf16>
    %cst_14 = arith.constant dense<0.000000e+00> : vector<64x128xf32>
    %32 = tpu.matmul %23, %31, %cst_14 {dimension_numbers = #tpu.dot_dimension_numbers<[1], [0], [0], [1], [0, 0, 1, 1], [], []>} : vector<64x128xbf16>, vector<128x128xbf16>, vector<64x128xf32> -> vector<64x128xf32>
    %c1_i32_15 = arith.constant 1 : i32
    %33 = tpu.dynamic_rotate %26 by %c1_i32_15 dim 0 : vector<64x128xf32>, i32 -> vector<64x128xf32>
    %cst_16 = arith.constant 0.000000e+00 : f32
    %34 = vector.shape_cast %19 : vector<64x1xi1> to vector<64x1xi1>
    %35 = vector.broadcast %34 : vector<64x1xi1> to vector<64x128xi1>
    %36 = vector.broadcast %cst_16 : f32 to vector<64x128xf32>
    %37 = arith.select %35, %36, %33 : vector<64x128xi1>, vector<64x128xf32>
    %c63_i32 = arith.constant 63 : i32
    %38 = tpu.dynamic_rotate %32 by %c63_i32 dim 0 : vector<64x128xf32>, i32 -> vector<64x128xf32>
    %cst_17 = arith.constant 0.000000e+00 : f32
    %39 = vector.shape_cast %21 : vector<64x1xi1> to vector<64x1xi1>
    %40 = vector.broadcast %39 : vector<64x1xi1> to vector<64x128xi1>
    %41 = vector.broadcast %cst_17 : f32 to vector<64x128xf32>
    %42 = arith.select %40, %41, %38 : vector<64x128xi1>, vector<64x128xf32>
    %43 = arith.addf %29, %37 : vector<64x128xf32>
    %44 = arith.addf %43, %42 : vector<64x128xf32>
    %c0_18 = arith.constant 0 : index
    %c0_19 = arith.constant 0 : index
    %45 = vector.load %arg3[%c0_18, %c0_19] : memref<1x128xf32, #tpu.memory_space<vmem>>, vector<1x128xf32>
    %46 = vector.broadcast %45 : vector<1x128xf32> to vector<64x128xf32>
    %47 = arith.addf %44, %46 : vector<64x128xf32>
    %cst_20 = arith.constant 0.000000e+00 : f32
    %48 = vector.broadcast %cst_20 : f32 to vector<64x128xf32>
    %49 = arith.maximumf %47, %48 : vector<64x128xf32>
    %50 = arith.truncf %49 : vector<64x128xf32> to vector<64x128xbf16>
    %c0_21 = arith.constant 0 : index
    %c0_22 = arith.constant 0 : index
    %c0_23 = arith.constant 0 : index
    %51 = vector.load %arg4[%c0_21, %c0_22, %c0_23] : memref<3x128x128xbf16, #tpu.memory_space<vmem>>, vector<1x128x128xbf16>
    %52 = vector.shape_cast %51 : vector<1x128x128xbf16> to vector<128x128xbf16>
    %cst_24 = arith.constant dense<0.000000e+00> : vector<64x128xf32>
    %53 = tpu.matmul %50, %52, %cst_24 {dimension_numbers = #tpu.dot_dimension_numbers<[1], [0], [0], [1], [0, 0, 1, 1], [], []>} : vector<64x128xbf16>, vector<128x128xbf16>, vector<64x128xf32> -> vector<64x128xf32>
    %c1_25 = arith.constant 1 : index
    %c0_26 = arith.constant 0 : index
    %c0_27 = arith.constant 0 : index
    %54 = vector.load %arg4[%c1_25, %c0_26, %c0_27] : memref<3x128x128xbf16, #tpu.memory_space<vmem>>, vector<1x128x128xbf16>
    %55 = vector.shape_cast %54 : vector<1x128x128xbf16> to vector<128x128xbf16>
    %cst_28 = arith.constant dense<0.000000e+00> : vector<64x128xf32>
    %56 = tpu.matmul %50, %55, %cst_28 {dimension_numbers = #tpu.dot_dimension_numbers<[1], [0], [0], [1], [0, 0, 1, 1], [], []>} : vector<64x128xbf16>, vector<128x128xbf16>, vector<64x128xf32> -> vector<64x128xf32>
    %c2_29 = arith.constant 2 : index
    %c0_30 = arith.constant 0 : index
    %c0_31 = arith.constant 0 : index
    %57 = vector.load %arg4[%c2_29, %c0_30, %c0_31] : memref<3x128x128xbf16, #tpu.memory_space<vmem>>, vector<1x128x128xbf16>
    %58 = vector.shape_cast %57 : vector<1x128x128xbf16> to vector<128x128xbf16>
    %cst_32 = arith.constant dense<0.000000e+00> : vector<64x128xf32>
    %59 = tpu.matmul %50, %58, %cst_32 {dimension_numbers = #tpu.dot_dimension_numbers<[1], [0], [0], [1], [0, 0, 1, 1], [], []>} : vector<64x128xbf16>, vector<128x128xbf16>, vector<64x128xf32> -> vector<64x128xf32>
    %c1_i32_33 = arith.constant 1 : i32
    %60 = tpu.dynamic_rotate %53 by %c1_i32_33 dim 0 : vector<64x128xf32>, i32 -> vector<64x128xf32>
    %cst_34 = arith.constant 0.000000e+00 : f32
    %61 = vector.shape_cast %19 : vector<64x1xi1> to vector<64x1xi1>
    %62 = vector.broadcast %61 : vector<64x1xi1> to vector<64x128xi1>
    %63 = vector.broadcast %cst_34 : f32 to vector<64x128xf32>
    %64 = arith.select %62, %63, %60 : vector<64x128xi1>, vector<64x128xf32>
    %c63_i32_35 = arith.constant 63 : i32
    %65 = tpu.dynamic_rotate %59 by %c63_i32_35 dim 0 : vector<64x128xf32>, i32 -> vector<64x128xf32>
    %cst_36 = arith.constant 0.000000e+00 : f32
    %66 = vector.shape_cast %21 : vector<64x1xi1> to vector<64x1xi1>
    %67 = vector.broadcast %66 : vector<64x1xi1> to vector<64x128xi1>
    %68 = vector.broadcast %cst_36 : f32 to vector<64x128xf32>
    %69 = arith.select %67, %68, %65 : vector<64x128xi1>, vector<64x128xf32>
    %70 = arith.addf %56, %64 : vector<64x128xf32>
    %71 = arith.addf %70, %69 : vector<64x128xf32>
    %c0_37 = arith.constant 0 : index
    %c0_38 = arith.constant 0 : index
    %72 = vector.load %arg5[%c0_37, %c0_38] : memref<1x128xf32, #tpu.memory_space<vmem>>, vector<1x128xf32>
    %73 = vector.broadcast %72 : vector<1x128xf32> to vector<64x128xf32>
    %74 = arith.addf %71, %73 : vector<64x128xf32>
    %75 = vector.shape_cast %74 : vector<64x128xf32> to vector<8x8x128xf32>
    %cst_39 = arith.constant dense<0.000000e+00> : vector<8x128xf32>
    %76 = vector.multi_reduction <add>, %75, %cst_39 [1] : vector<8x8x128xf32> to vector<8x128xf32>
    %c0_40 = arith.constant 0 : index
    %c0_41 = arith.constant 0 : index
    %77 = vector.load %arg6[%c0_40, %c0_41] : memref<2x128xf32, #tpu.memory_space<vmem>>, vector<1x128xf32>
    %78 = vector.broadcast %77 : vector<1x128xf32> to vector<8x128xf32>
    %79 = arith.mulf %76, %78 : vector<8x128xf32>
    %cst_42 = arith.constant dense<0.000000e+00> : vector<8xf32>
    %80 = vector.multi_reduction <add>, %79, %cst_42 [1] : vector<8x128xf32> to vector<8xf32>
    %81 = vector.shape_cast %80 : vector<8xf32> to vector<8x1xf32>
    %c0_43 = arith.constant 0 : index
    %c0_44 = arith.constant 0 : index
    %82 = vector.load %arg7[%c0_43, %c0_44] : memref<1x2xf32, #tpu.memory_space<vmem>>, vector<1x1xf32>
    %83 = vector.broadcast %82 : vector<1x1xf32> to vector<8x1xf32>
    %84 = arith.addf %81, %83 : vector<8x1xf32>
    %cst_45 = arith.constant 0.000000e+00 : f32
    %85 = vector.broadcast %cst_45 : f32 to vector<8x1xf32>
    %86 = arith.maximumf %84, %85 : vector<8x1xf32>
    %c1_46 = arith.constant 1 : index
    %c0_47 = arith.constant 0 : index
    %87 = vector.load %arg6[%c1_46, %c0_47] : memref<2x128xf32, #tpu.memory_space<vmem>>, vector<1x128xf32>
    %88 = vector.broadcast %87 : vector<1x128xf32> to vector<8x128xf32>
    %89 = arith.mulf %76, %88 : vector<8x128xf32>
    %cst_48 = arith.constant dense<0.000000e+00> : vector<8xf32>
    %90 = vector.multi_reduction <add>, %89, %cst_48 [1] : vector<8x128xf32> to vector<8xf32>
    %91 = vector.shape_cast %90 : vector<8xf32> to vector<8x1xf32>
    %c0_49 = arith.constant 0 : index
    %c1_50 = arith.constant 1 : index
    %92 = vector.load %arg7[%c0_49, %c1_50] : memref<1x2xf32, #tpu.memory_space<vmem>>, vector<1x1xf32>
    %93 = vector.broadcast %92 : vector<1x1xf32> to vector<8x1xf32>
    %94 = arith.addf %91, %93 : vector<8x1xf32>
    %cst_51 = arith.constant 0.000000e+00 : f32
    %95 = vector.broadcast %cst_51 : f32 to vector<8x1xf32>
    %96 = arith.maximumf %94, %95 : vector<8x1xf32>
    %c0_52 = arith.constant 0 : index
    %c0_53 = arith.constant 0 : index
    %97 = vector.load %arg8[%c0_52, %c0_53] : memref<2x128xf32, #tpu.memory_space<vmem>>, vector<1x128xf32>
    %98 = vector.broadcast %86 : vector<8x1xf32> to vector<8x128xf32>
    %99 = vector.broadcast %97 : vector<1x128xf32> to vector<8x128xf32>
    %100 = arith.mulf %98, %99 : vector<8x128xf32>
    %c1_54 = arith.constant 1 : index
    %c0_55 = arith.constant 0 : index
    %101 = vector.load %arg8[%c1_54, %c0_55] : memref<2x128xf32, #tpu.memory_space<vmem>>, vector<1x128xf32>
    %102 = vector.broadcast %96 : vector<8x1xf32> to vector<8x128xf32>
    %103 = vector.broadcast %101 : vector<1x128xf32> to vector<8x128xf32>
    %104 = arith.mulf %102, %103 : vector<8x128xf32>
    %105 = arith.addf %100, %104 : vector<8x128xf32>
    %c0_56 = arith.constant 0 : index
    %c0_57 = arith.constant 0 : index
    %106 = vector.load %arg9[%c0_56, %c0_57] : memref<1x128xf32, #tpu.memory_space<vmem>>, vector<1x128xf32>
    %107 = vector.broadcast %106 : vector<1x128xf32> to vector<8x128xf32>
    %108 = arith.addf %105, %107 : vector<8x128xf32>
    %109 = arith.negf %108 : vector<8x128xf32>
    %110 = math.exp %109 : vector<8x128xf32>
    %cst_58 = arith.constant 1.000000e+00 : f32
    %111 = vector.broadcast %cst_58 : f32 to vector<8x128xf32>
    %112 = arith.addf %111, %110 : vector<8x128xf32>
    %113 = arith.divf %111, %112 : vector<8x128xf32>
    %114 = vector.shape_cast %113 : vector<8x128xf32> to vector<8x1x128xf32>
    %115 = vector.broadcast %114 : vector<8x1x128xf32> to vector<8x8x128xf32>
    %116 = arith.mulf %75, %115 : vector<8x8x128xf32>
    %117 = arith.addf %116, %0 : vector<8x8x128xf32>
    %cst_59 = arith.constant 0.000000e+00 : f32
    %118 = vector.broadcast %cst_59 : f32 to vector<8x8x128xf32>
    %119 = arith.maximumf %117, %118 : vector<8x8x128xf32>
    %c0_60 = arith.constant 0 : index
    %c0_61 = arith.constant 0 : index
    %c0_62 = arith.constant 0 : index
    %120 = vector.load %arg10[%c0_60, %c0_61, %c0_62] : memref<8x8x128xf32, #tpu.memory_space<vmem>>, vector<8x8x128xf32>
    tpu.vector_store %arg10[%c0_60, %c0_61, %c0_62], %119 {strides = array<i32>} : memref<8x8x128xf32, #tpu.memory_space<vmem>>, vector<8x8x128xf32>,
    return
  }
  func.func @transform_0(%arg0: i32) -> (i32, i32, i32) {
    %c0_i32 = arith.constant 0 : i32
    %c0_i32_0 = arith.constant 0 : i32
    %c0_i32_1 = arith.constant 0 : i32
    return %arg0, %c0_i32, %c0_i32_0 : i32, i32, i32
  }
  func.func @transform_1(%arg0: i32) -> (i32, i32, i32) {
    %c0_i32 = arith.constant 0 : i32
    %c0_i32_0 = arith.constant 0 : i32
    %c0_i32_1 = arith.constant 0 : i32
    %c0_i32_2 = arith.constant 0 : i32
    return %c0_i32, %c0_i32_0, %c0_i32_1 : i32, i32, i32
  }
  func.func @transform_2(%arg0: i32) -> (i32, i32) {
    %c0_i32 = arith.constant 0 : i32
    %c0_i32_0 = arith.constant 0 : i32
    %c0_i32_1 = arith.constant 0 : i32
    return %c0_i32, %c0_i32_0 : i32, i32
  }
  func.func @transform_3(%arg0: i32) -> (i32, i32, i32) {
    %c0_i32 = arith.constant 0 : i32
    %c0_i32_0 = arith.constant 0 : i32
    %c0_i32_1 = arith.constant 0 : i32
    %c0_i32_2 = arith.constant 0 : i32
    return %c0_i32, %c0_i32_0, %c0_i32_1 : i32, i32, i32
  }
  func.func @transform_4(%arg0: i32) -> (i32, i32) {
    %c0_i32 = arith.constant 0 : i32
    %c0_i32_0 = arith.constant 0 : i32
    %c0_i32_1 = arith.constant 0 : i32
    return %c0_i32, %c0_i32_0 : i32, i32
  }
  func.func @transform_5(%arg0: i32) -> (i32, i32) {
    %c0_i32 = arith.constant 0 : i32
    %c0_i32_0 = arith.constant 0 : i32
    %c0_i32_1 = arith.constant 0 : i32
    return %c0_i32, %c0_i32_0 : i32, i32
  }
  func.func @transform_6(%arg0: i32) -> (i32, i32) {
    %c0_i32 = arith.constant 0 : i32
    %c0_i32_0 = arith.constant 0 : i32
    %c0_i32_1 = arith.constant 0 : i32
    return %c0_i32, %c0_i32_0 : i32, i32
  }
  func.func @transform_7(%arg0: i32) -> (i32, i32) {
    %c0_i32 = arith.constant 0 : i32
    %c0_i32_0 = arith.constant 0 : i32
    %c0_i32_1 = arith.constant 0 : i32
    return %c0_i32, %c0_i32_0 : i32, i32
  }
  func.func @transform_8(%arg0: i32) -> (i32, i32) {
    %c0_i32 = arith.constant 0 : i32
    %c0_i32_0 = arith.constant 0 : i32
    %c0_i32_1 = arith.constant 0 : i32
    return %c0_i32, %c0_i32_0 : i32, i32
  }
  func.func @transform_9(%arg0: i32) -> (i32, i32, i32) {
    %c0_i32 = arith.constant 0 : i32
    %c0_i32_0 = arith.constant 0 : i32
    %c0_i32_1 = arith.constant 0 : i32
    return %arg0, %c0_i32, %c0_i32_0 : i32, i32, i32
  }
}

</mosaic_0001>

<bundles_post_ra>
// kernel: tpu_custom_call.1
= control target key start
LH: loop header
LB: loop body
LE: loop exit
PB: predicated region body
PF: predicated region fallthrough
CT: control target
= control target key end

     0   :  { %14 = vsyncpa [#allocation3], 0  ;;  %s2377_s0 = inlined_call_operand.hbm [shape: f32[8,8,128], index: 0, kind: input, shape index: {}]   ;;  %s2378_s1 = inlined_call_operand.hbm [shape: bf16[3,128,128], index: 1, kind: input, shape index: {}]   ;;  %s2379_s2 = inlined_call_operand.vmem [shape: f32[1,128], index: 2, kind: input, shape index: {}]   ;;  %s2380_s3 = inlined_call_operand.hbm [shape: bf16[3,128,128], index: 3, kind: input, shape index: {}]   ;;  %s2381_s4 = inlined_call_operand.vmem [shape: f32[1,128], index: 4, kind: input, shape index: {}]   ;;  %s2382_s5 = inlined_call_operand.vmem [shape: f32[2,128], index: 5, kind: input, shape index: {}]   ;;  %s2383_s6 = inlined_call_operand.vmem [shape: f32[1,2], index: 6, kind: input, shape index: {}]   ;;  %s2384_s7 = inlined_call_operand.vmem [shape: f32[2,128], index: 7, kind: input, shape index: {}]   ;;  %s2385_s8 = inlined_call_operand.vmem [shape: f32[1,128], index: 8, kind: input, shape index: {}]   ;;  %s2386_s9 = inlined_call_operand.hbm [shape: f32[8,8,128], index: 9, kind: output, shape index: {}]  }
   0x1   :  { %15 = vsyncpa [#allocation6], 0 }
   0x2   :  { %16 = vsyncpa [#allocation4], 0  ;;  %s1926_s30 = smov [#allocation5]  }
   0x3   :  { %s34_s10 = sshll.u32 %s1926_s30, 4  ;;  %s35_s10 = int_to_ptr.vmem [resolvable:$true] %s34_s10 }
   0x4   :  { %s1848_s11 = scalar_lea.vmem %s35_s10, 3072  ;;  %p1853_p1 = scmp.lt.s32.totalorder %s35_s10, %s35_s10 }
   0x5   :  { %p1849_p0 = scmp.ne.s32.totalorder %s35_s10, %s1848_s11  ;;  %p1854_p2 = scmp.lt.s32.totalorder %s1848_s11, %s1848_s11 }
   0x7   :  { %p1855_p3 = por %p1854_p2, %p1853_p1 }
   0x9   :  { %p1856_p4 = pnand %p1855_p3, %p1849_p0 }
   0xb   :  { %1859 = shalt.err (!%p1856_p4)
}
   0xc   :  { %s1927_s12 = smov 64   ;;  %s1928_s13 = smov 4  }
   0xd   :  { %40 = dma.hbm_to_vmem [thread:$0]  %s2378_s1, 3072, %s35_s10, [#allocation6], %s1927_s12, %s1927_s12, %s1928_s13  }
   0xe   :  { %s1929_s16 = smov [#allocation2]  }
   0xf   :  { %s22_s17 = sshll.u32 %s1929_s16, 4  ;;  %s23_s17 = int_to_ptr.vmem [resolvable:$true] %s22_s17 }
  0x10   :  { %s1868_s18 = scalar_lea.vmem %s23_s17, 1024  ;;  %p1873_p6 = scmp.lt.s32.totalorder %s23_s17, %s23_s17 }
  0x11   :  { %p1869_p5 = scmp.ne.s32.totalorder %s23_s17, %s1868_s18  ;;  %p1874_p7 = scmp.lt.s32.totalorder %s1868_s18, %s1868_s18 }
  0x13   :  { %p1875_p8 = por %p1874_p7, %p1873_p6 }
  0x15   :  { %p1876_p9 = pnand %p1875_p8, %p1869_p5 }
  0x17   :  { %1879 = shalt.err (!%p1876_p9)
}
  0x18   :  { %s1930_s19 = smov 128   ;;  %s1931_s20 = smov 8  }
  0x19   :  { %28 = dma.hbm_to_vmem [thread:$0]  %s2377_s0, 1024, %s23_s17, [#allocation3], %s1930_s19, %s1930_s19, %s1931_s20  }
  0x1a   :  { %s1932_s1 = smov [#allocation7]  }
  0x1b   :  { %s48_s23 = sshll.u32 %s1932_s1, 4  ;;  %s49_s23 = int_to_ptr.vmem [resolvable:$true] %s48_s23 }
  0x1c   :  { %s1888_s24 = scalar_lea.vmem %s49_s23, 3072  ;;  %p1893_p11 = scmp.lt.s32.totalorder %s49_s23, %s49_s23 }
  0x1d   :  { %p1889_p10 = scmp.ne.s32.totalorder %s49_s23, %s1888_s24  ;;  %p1894_p12 = scmp.lt.s32.totalorder %s1888_s24, %s1888_s24 }
  0x1f   :  { %p1895_p13 = por %p1894_p12, %p1893_p11 }
  0x21   :  { %p1896_p0 = pnand %p1895_p13, %p1889_p10 }
  0x23   :  { %1899 = shalt.err (!%p1896_p0)
}
  0x24   :  { %54 = dma.hbm_to_vmem [thread:$0]  %s2380_s3, 3072, %s49_s23, [#allocation6], %s1927_s12, %s1927_s12, %s1928_s13  }
  0x25   :  { %1920 = dma.done.wait [#allocation3], 1024  }
  0x26   :  { %1921 = vsyncadd [#allocation3], 4294966272 }
  0x27   :  { %1922 = dma.done.wait [#allocation6], 6144  }
  0x28   :  { %1923 = vsyncadd [#allocation6], 4294961152  ;;  %v1780_v0 = vld [vmem:[#allocation5 + $0x38] sm:$0xff]   ;;  %v1781_v1 = vld [vmem:[#allocation5 + $0x30] sm:$0xff]   ;;  %v83_v57 = vlaneseq }
  0x29   :  { %1622 = vmatprep.subr.bf16.mxu0 %v1780_v0  ;;  %v1782_v2 = vld [vmem:[#allocation5 + $0x28] sm:$0xff]   ;;  %v1784_v3 = vld [vmem:[#allocation5 + $0xb8] sm:$0xff]   ;;  %v1786_v4 = vld [vmem:[#allocation5 + $0xb0] sm:$0xff]  }
  0x2a   :  { %1623 = vmatpush3.bf16.msra.mxu0 %v1780_v0  ;;  %1646 = vmatprep.subr.bf16.mxu1 %v1784_v3  ;;  %v1783_v5 = vld [vmem:[#allocation5 + $0x20] sm:$0xff]   ;;  %v1788_v6 = vld [vmem:[#allocation5 + $0xa8] sm:$0xff]   ;;  %v1785_v7 = vld [vmem:[#allocation5 + $0x18] sm:$0xff]   ;;  %v2012_v60 = vshrl.u32 %v83_v57, 7 }
  0x2b   :  { %1624 = vmatprep.subr.bf16.mxu0 %v1781_v1  ;;  %1647 = vmatpush3.bf16.msra.mxu1 %v1784_v3  ;;  %v1790_v8 = vld [vmem:[#allocation5 + $0xa0] sm:$0xff]   ;;  %v76_v10 = vld [vmem:[#allocation2 + $0x8] sm:$0xff]  ;;  %v1787_v12 = vld [vmem:[#allocation5 + $0x10] sm:$0xff]  }
  0x2c   :  { %1648 = vmatprep.subr.bf16.mxu1 %v1786_v4  ;;  %v75_v9 = vld [vmem:[#allocation2] sm:$0xff]  ;;  %v1792_v13 = vld [vmem:[#allocation5 + $0x98] sm:$0xff]   ;;  %v1789_v14 = vld [vmem:[#allocation5 + $0x8] sm:$0xff]   ;;  %v86_v63 = vadd.s32 16, %v2012_v60  ;;  %v87_v0 = vadd.s32 24, %v2012_v60  ;;  %vm492_vm0 = vcmp.lt.s32.totalorder %v2012_v60, 1 }
  0x2d   :  { %v204_v11 = vpack.c.bf16 %v76_v10, %v75_v9  ;;  %v1794_v15 = vld [vmem:[#allocation5 + $0x90] sm:$0xff]   ;;  %v1791_v16 = vld [vmem:[#allocation5] sm:$0xff]   ;;  %v1796_v17 = vld [vmem:[#allocation5 + $0x88] sm:$0xff]   ;;  %vm2387_vm6 = vcmp.lt.s32.totalorder %v2012_v60, 7 }
  0x2e   :  { %1625 = vmatpush3.bf16.msra.mxu0 %v1781_v1  ;;  %v77_v18 = vld [vmem:[#allocation2 + $0x10] sm:$0xff]  ;;  %v78_v19 = vld [vmem:[#allocation2 + $0x18] sm:$0xff]  ;;  %v79_v21 = vld [vmem:[#allocation2 + $0x20] sm:$0xff]  ;;  %v85_v1 = vadd.s32 8, %v2012_v60 }
  0x2f   :  { %1626 = vmatprep.subr.bf16.mxu0 %v1782_v2  ;;  %1649 = vmatpush3.bf16.msra.mxu1 %v1786_v4  ;;  %v1793_v20 = vld [vmem:[#allocation5 + $0x78] sm:$0xff]   ;;  %v80_v22 = vld [vmem:[#allocation2 + $0x28] sm:$0xff]  ;;  %v1798_v23 = vld [vmem:[#allocation5 + $0x80] sm:$0xff]   ;;  %v205_v24 = vpack.c.bf16 %v78_v19, %v77_v18  ;;  %v110_v4 = vand.u32 7, %v86_v63  ;;  %v2395_v19 = vmov 0 }
  0x30   :  { %1650 = vmatprep.subr.bf16.mxu1 %v1788_v6  ;;  %1638 = vmatprep.mubr.bf16.mxu0 %v204_v11  ;;  %v1795_v25 = vld [vmem:[#allocation5 + $0x70] sm:$0xff]   ;;  %v206_v26 = vpack.c.bf16 %v80_v22, %v79_v21  ;;  %v82_v28 = vld [vmem:[#allocation2 + $0x38] sm:$0xff]  ;;  %v1797_v29 = vld [vmem:[#allocation5 + $0x68] sm:$0xff]  }
  0x31   :  { %1662 = vmatprep.mubr.bf16.mxu1 %v204_v11  ;;  %v81_v27 = vld [vmem:[#allocation2 + $0x30] sm:$0xff]  ;;  %v1799_v31 = vld [vmem:[#allocation5 + $0x60] sm:$0xff]   ;;  %v1800_v32 = vld [vmem:[#allocation5 + $0x58] sm:$0xff]   ;;  %vm2037_vm1 = vcmp.eq.s32.totalorder %v110_v4, 0  ;;  %vm2068_vm5 = vcmp.eq.s32.totalorder %v110_v4, 7 }
  0x32   :  { %1627 = vmatpush3.bf16.msra.mxu0 %v1782_v2  ;;  %v207_v30 = vpack.c.bf16 %v82_v28, %v81_v27  ;;  %v1801_v33 = vld [vmem:[#allocation5 + $0x50] sm:$0xff]   ;;  %v1802_v34 = vld [vmem:[#allocation5 + $0x48] sm:$0xff]   ;;  %v1803_v35 = vld [vmem:[#allocation5 + $0x40] sm:$0xff]  }
  0x33   :  { %1628 = vmatprep.subr.bf16.mxu0 %v1783_v5  ;;  %1651 = vmatpush3.bf16.msra.mxu1 %v1788_v6  ;;  %v1804_v36 = vld [vmem:[#allocation7 + $0x38] sm:$0xff]   ;;  %v1806_v38 = vld [vmem:[#allocation7 + $0x30] sm:$0xff]   ;;  %v1808_v40 = vld [vmem:[#allocation7 + $0x28] sm:$0xff]   ;;  %v103_v6 = vand.u32 7, %v85_v1 }
  0x34   :  { %1652 = vmatprep.subr.bf16.mxu1 %v1790_v8  ;;  %v1805_v37 = vld [vmem:[#allocation7 + $0xb8] sm:$0xff]   ;;  %v1807_v39 = vld [vmem:[#allocation7 + $0xb0] sm:$0xff]   ;;  %v1809_v41 = vld [vmem:[#allocation7 + $0xa8] sm:$0xff]  }
  0x35   :  { %v1810_v42 = vld [vmem:[#allocation7 + $0x20] sm:$0xff]   ;;  %v1812_v44 = vld [vmem:[#allocation7 + $0x18] sm:$0xff]   ;;  %v1814_v46 = vld [vmem:[#allocation7 + $0x10] sm:$0xff]   ;;  %vm2050_vm3 = vcmp.eq.s32.totalorder %v103_v6, 0  ;;  %vm2104_vm11 = vcmp.eq.s32.totalorder %v103_v6, 7 }
  0x36   :  { %1629 = vmatpush3.bf16.msra.mxu0 %v1783_v5  ;;  %v1811_v43 = vld [vmem:[#allocation7 + $0xa0] sm:$0xff]   ;;  %v1813_v45 = vld [vmem:[#allocation7 + $0x98] sm:$0xff]   ;;  %v1815_v47 = vld [vmem:[#allocation7 + $0x90] sm:$0xff]   ;;  %v117_v5 = vand.u32 7, %v87_v0  ;;  %v2396_v19 = vsel %vm2050_vm3, 4294967295, %v2395_v19 }
  0x37   :  { %1630 = vmatprep.subr.bf16.mxu0 %v1785_v7  ;;  %1653 = vmatpush3.bf16.msra.mxu1 %v1790_v8  ;;  %v1816_v48 = vld [vmem:[#allocation7 + $0x8] sm:$0xff]   ;;  %v1818_v50 = vld [vmem:[#allocation7] sm:$0xff]   ;;  %v1999_v52 = vld [vmem:[#allocation7 + $0x78] sm:$0xff]   ;;  %v2027_v8 = vadd.s32 32, %v2012_v60 }
  0x38   :  { %1654 = vmatprep.subr.bf16.mxu1 %v1792_v13  ;;  %v1817_v49 = vld [vmem:[#allocation7 + $0x88] sm:$0xff]   ;;  %v1819_v51 = vld [vmem:[#allocation7 + $0x80] sm:$0xff]   ;;  %vm2041_vm2 = vcmp.eq.s32.totalorder %v117_v5, 0  ;;  %vm2100_vm10 = vcmp.eq.s32.totalorder %v117_v5, 7 }
  0x39   :  { %v124_v21 = vand.u32 7, %v2027_v8 }
  0x3a   :  { %1631 = vmatpush3.bf16.msra.mxu0 %v1785_v7  ;;  %v90_v7 = vadd.s32 48, %v2012_v60 }
  0x3b   :  { %1632 = vmatprep.subr.bf16.mxu0 %v1787_v12  ;;  %1655 = vmatpush3.bf16.msra.mxu1 %v1792_v13  ;;  %vm2089_vm8 = vcmp.eq.s32.totalorder %v124_v21, 0 }
  0x3c   :  { %1656 = vmatprep.subr.bf16.mxu1 %v1794_v15 }
  0x3e   :  { %1633 = vmatpush3.bf16.msra.mxu0 %v1787_v12  ;;  %v91_v12 = vadd.s32 56, %v2012_v60 }
  0x3f   :  { %1634 = vmatprep.subr.bf16.mxu0 %v1789_v14  ;;  %1657 = vmatpush3.bf16.msra.mxu1 %v1794_v15 }
  0x40   :  { %1658 = vmatprep.subr.bf16.mxu1 %v1796_v17 }
  0x42   :  { %1635 = vmatpush3.bf16.msra.mxu0 %v1789_v14  ;;  %v2237_v14 = vld [vmem:[%s2381_s4] ss:$0 sm:$0xff] }
  0x43   :  { %1636 = vmatprep.subr.bf16.mxu0 %v1791_v16  ;;  %1659 = vmatpush3.bf16.msra.mxu1 %v1796_v17 }
  0x44   :  { %1660 = vmatprep.subr.bf16.mxu1 %v1798_v23 }
  0x46   :  { %1637 = vmatpush3.bf16.msra.mxu0 %v1791_v16  ;;  %v2046_v16 = vadd.s32 40, %v2012_v60 }
  0x47   :  { %1670 = vmatprep.subr.bf16.mxu0 %v1793_v20  ;;  %1661 = vmatpush3.bf16.msra.mxu1 %v1798_v23 }
  0x48   :  { %1694 = vmatprep.subr.bf16.mxu1 %v1804_v36 }
  0x49   :  { %1639 = vmatmul.mubr.bf16.vlgmr.msra.gmra.mxu0 %v205_v24 }
  0x4a   :  { %1671 = vmatpush3.bf16.msra.mxu0 %v1793_v20  ;;  %1642 = vmatprep.mubr.bf16.mxu0 %v206_v26  ;;  %v138_v20 = vand.u32 7, %v90_v7 }
  0x4b   :  { %1672 = vmatprep.subr.bf16.mxu0 %v1795_v25  ;;  %1663 = vmatmul.mubr.bf16.vlgmr.msra.gmra.mxu1 %v205_v24 }
  0x4c   :  { %1666 = vmatprep.mubr.bf16.mxu1 %v206_v26  ;;  %1695 = vmatpush3.bf16.msra.mxu1 %v1804_v36  ;;  %vm2085_vm7 = vcmp.eq.s32.totalorder %v138_v20, 0  ;;  %vm2125_vm13 = vcmp.eq.s32.totalorder %v138_v20, 7 }
  0x4d   :  { %1696 = vmatprep.subr.bf16.mxu1 %v1806_v38 }
  0x4e   :  { %1673 = vmatpush3.bf16.msra.mxu0 %v1795_v25 }
  0x4f   :  { %1674 = vmatprep.subr.bf16.mxu0 %v1797_v29 }
  0x50   :  { %1697 = vmatpush3.bf16.msra.mxu1 %v1806_v38  ;;  %v2401_v38 = vmov 0 }
  0x51   :  { %1643 = vmatmul.mubr.bf16.gmra.mxu0 %v207_v30  ;;  %1698 = vmatprep.subr.bf16.mxu1 %v1808_v40  ;;  %v2402_v38 = vsel %vm2085_vm7, 4294967295, %v2401_v38 }
  0x52   :  { %1675 = vmatpush3.bf16.msra.mxu0 %v1797_v29  ;;  %1686 = vmatprep.mubr.bf16.mxu0 %v204_v11  ;;  %v96_v11 = vand.u32 7, %v2012_v60 }
  0x53   :  { %1676 = vmatprep.subr.bf16.mxu0 %v1799_v31  ;;  %1667 = vmatmul.mubr.bf16.gmra.mxu1 %v207_v30 }
  0x54   :  { %1699 = vmatpush3.bf16.msra.mxu1 %v1808_v40  ;;  %vm2058_vm4 = vcmp.eq.s32.totalorder %v96_v11, 0  ;;  %vm2096_vm9 = vcmp.eq.s32.totalorder %v96_v11, 7 }
  0x55   :  { %1700 = vmatprep.subr.bf16.mxu1 %v1810_v42 }
  0x56   :  { %1677 = vmatpush3.bf16.msra.mxu0 %v1799_v31 }
  0x57   :  { %1678 = vmatprep.subr.bf16.mxu0 %v1800_v32 }
  0x58   :  { %1701 = vmatpush3.bf16.msra.mxu1 %v1810_v42 }
  0x59   :  { %1702 = vmatprep.subr.bf16.mxu1 %v1812_v44 }
  0x5a   :  { %1679 = vmatpush3.bf16.msra.mxu0 %v1800_v32 }
  0x5b   :  { %1680 = vmatprep.subr.bf16.mxu0 %v1801_v33 }
  0x5c   :  { %1703 = vmatpush3.bf16.msra.mxu1 %v1812_v44  ;;  %v2407_v44 = vmov 0 }
  0x5d   :  { %1704 = vmatprep.subr.bf16.mxu1 %v1814_v46  ;;  %v2408_v44 = vsel %vm2100_vm10, 4294967295, %v2407_v44 }
  0x5e   :  { %1681 = vmatpush3.bf16.msra.mxu0 %v1801_v33 }
  0x5f   :  { %1682 = vmatprep.subr.bf16.mxu0 %v1802_v34 }
  0x60   :  { %1705 = vmatpush3.bf16.msra.mxu1 %v1814_v46 }
  0x61   :  { %1706 = vmatprep.subr.bf16.mxu1 %v1816_v48 }
  0x62   :  { %1683 = vmatpush3.bf16.msra.mxu0 %v1802_v34  ;;  %v131_v34 = vand.u32 7, %v2046_v16 }
  0x63   :  { %1684 = vmatprep.subr.bf16.mxu0 %v1803_v35 }
  0x64   :  { %1707 = vmatpush3.bf16.msra.mxu1 %v1816_v48  ;;  %vm2134_vm14 = vcmp.eq.s32.totalorder %v131_v34, 0 }
  0x65   :  { %1708 = vmatprep.subr.bf16.mxu1 %v1818_v50 }
  0x66   :  { %1685 = vmatpush3.bf16.msra.mxu0 %v1803_v35 }
  0x67   :  { %1718 = vmatprep.subr.bf16.mxu0 %v1805_v37 }
  0x68   :  { %1709 = vmatpush3.bf16.msra.mxu1 %v1818_v50 }
  0x69   :  { %1687 = vmatmul.mubr.bf16.vlgmr.msra.gmra.mxu0 %v205_v24  ;;  %1742 = vmatprep.subr.bf16.mxu1 %v1999_v52 }
  0x6a   :  { %1690 = vmatprep.mubr.bf16.mxu0 %v206_v26  ;;  %1719 = vmatpush3.bf16.msra.mxu0 %v1805_v37  ;;  %v145_v26 = vand.u32 7, %v91_v12 }
  0x6b   :  { %1720 = vmatprep.subr.bf16.mxu0 %v1807_v39 }
  0x6c   :  { %vm2108_vm12 = vcmp.eq.s32.totalorder %v145_v26, 0  ;;  %vm2145_vm15 = vcmp.eq.s32.totalorder %v145_v26, 7 }
  0x6e   :  { %1721 = vmatpush3.bf16.msra.mxu0 %v1807_v39 }
  0x6f   :  { %1722 = vmatprep.subr.bf16.mxu0 %v1809_v41 }
  0x71   :  { %1691 = vmatmul.mubr.bf16.gmra.mxu0 %v207_v30 }
  0x72   :  { %1723 = vmatpush3.bf16.msra.mxu0 %v1809_v41 }
  0x73   :  { %1724 = vmatprep.subr.bf16.mxu0 %v1811_v43 }
  0x76   :  { %1725 = vmatpush3.bf16.msra.mxu0 %v1811_v43 }
  0x77   :  { %1726 = vmatprep.subr.bf16.mxu0 %v1813_v45 }
  0x7a   :  { %1727 = vmatpush3.bf16.msra.mxu0 %v1813_v45 }
  0x7b   :  { %1728 = vmatprep.subr.bf16.mxu0 %v1815_v47 }
  0x7e   :  { %1729 = vmatpush3.bf16.msra.mxu0 %v1815_v47 }
  0x7f   :  { %1730 = vmatprep.subr.bf16.mxu0 %v1817_v49 }
  0x82   :  { %1731 = vmatpush3.bf16.msra.mxu0 %v1817_v49 }
  0x83   :  { %1732 = vmatprep.subr.bf16.mxu0 %v1819_v51 }
  0x86   :  { %1733 = vmatpush3.bf16.msra.mxu0 %v1819_v51 }
 0x109   :  { %v1640_v53 = vpop.f32.mrf.mxu0 }
 0x10a   :  { %v486_v22 = vrot.slane %v1640_v53, 7 }
 0x10b   :  { %v2002_v54 = vpop.f32.mrf.mxu0  ;;  %v2006_v56 = vpop.f32.mrf.mxu1 }
 0x10c   :  { %v484_v23 = vrot.slane %v2002_v54, 7  ;;  %v527_v27 = vrot.slane %v2006_v56, 1 }
 0x10d   :  { %v2004_v55 = vpop.f32.mrf.mxu0  ;;  %v2010_v59 = vpop.f32.mrf.mxu1 }
 0x10e   :  { %v487_v17 = vrot.slane %v2004_v55, 7  ;;  %v525_v28 = vrot.slane %v2010_v59, 1 }
 0x10f   :  { %v2008_v58 = vpop.f32.mrf.mxu0  ;;  %v2016_v62 = vpop.f32.mrf.mxu1 }
 0x110   :  { %v485_v13 = vrot.slane %v2008_v58, 7  ;;  %v528_v29 = vrot.slane %v2016_v62, 1  ;;  %v497_v37 = vsel %vm492_vm0, %v486_v22, %v487_v17 }
 0x111   :  { %v2014_v61 = vpop.f32.mrf.mxu0  ;;  %v2023_v3 = vpop.f32.mrf.mxu1  ;;  %v520_v57 = vsel %vm2041_vm2, 0.0, %v497_v37 }
 0x112   :  { %v526_v30 = vrot.slane %v2023_v3, 1  ;;  %v498_v33 = vsel %vm492_vm0, %v485_v13, %v486_v22  ;;  %v490_v40 = vrot.slane %v2014_v61, 7  ;;  %v538_v49 = vsel %vm2387_vm6, %v527_v27, %v528_v29 }
 0x113   :  { %v2021_v2 = vpop.f32.mrf.mxu0  ;;  %v2031_v10 = vpop.f32.mrf.mxu1  ;;  %v519_v48 = vsel %vm2037_vm1, 0.0, %v498_v33  ;;  %v499_v0 = vsel %vm492_vm0, %v484_v23, %v485_v13  ;;  %v560_v4 = vsel %vm2068_vm5, 0.0, %v538_v49 }
 0x114   :  { %v540_v50 = vsel %vm2387_vm6, %v525_v28, %v526_v30  ;;  %v488_v61 = vrot.slane %v2021_v2, 7  ;;  %v531_v3 = vrot.slane %v2031_v10, 1  ;;  %v539_v6 = vsel %vm2387_vm6, %v526_v30, %v527_v27 }
 0x115   :  { %v2029_v9 = vpop.f32.mrf.mxu0  ;;  %v2056_v24 = vpop.f32.mrf.mxu1  ;;  %v558_v5 = vsel %vm2096_vm9, 0.0, %v540_v50  ;;  %v518_v22 = vsel %vm2050_vm3, 0.0, %v499_v0  ;;  %vm2421_vm3 = vcmp.lt.s32.totalorder %v2012_v60, 7 }
 0x116   :  { %v491_v18 = vrot.slane %v2029_v9, 7  ;;  %v529_v35 = vrot.slane %v2056_v24, 1  ;;  %v1517_v24 = vld [vmem:[%s2379_s2] ss:$0 sm:$0xff]  ;;  %v496_v30 = vsel %vm492_vm0, %v487_v17, %v488_v61 }
 0x117   :  { %v2066_v31 = vpop.f32.mrf.mxu0  ;;  %v2094_v41 = vpop.f32.mrf.mxu1  ;;  %v521_v50 = vsel %vm2089_vm8, 0.0, %v496_v30  ;;  %v1822_v30 = vld [vmem:[#allocation7 + $0x68] sm:$0xff]  }
 0x118   :  { %v500_v36 = vsel %vm492_vm0, %v491_v18, %v484_v23  ;;  %v489_v47 = vrot.slane %v2066_v31, 7  ;;  %v537_v63 = vsel %vm2387_vm6, %v528_v29, %v529_v35  ;;  %v532_v13 = vrot.slane %v2094_v41, 1 }
 0x119   :  { %v517_v53 = vsel %vm2058_vm4, 0.0, %v500_v36  ;;  %v472_v56 = vpop.f32.mrf.mxu1  ;;  %v561_v20 = vsel %vm2100_vm10, 0.0, %v537_v63  ;;  %vm2159_vm6 = vcmp.eq.s32.totalorder %v124_v21, 7  ;;  %v559_v31 = vsel %vm2104_vm11, 0.0, %v539_v6  ;;  %vm2422_vm10 = vmmov %vm2421_vm3 }
 0x11a   :  { %v530_v11 = vrot.slane %v472_v56, 1  ;;  %v494_v10 = vsel %vm492_vm0, %v489_v47, %v490_v40  ;;  %v534_v36 = vsel %vm2421_vm3, %v531_v3, %v532_v13  ;;  %v493_v21 = vsel %vm492_vm0, %v490_v40, %v491_v18 }
 0x11b   :  { %v523_v33 = vsel %vm2085_vm7, 0.0, %v494_v10  ;;  %vm2181_vm7 = vcmp.eq.s32.totalorder %v131_v34, 7  ;;  %v524_v18 = vsel %vm2108_vm12, 0.0, %v493_v21  ;;  %v495_v40 = vsel %vm492_vm0, %v488_v61, %v489_v47 }
 0x11c   :  { %v536_v17 = vsel %vm2422_vm10, %v529_v35, %v530_v11  ;;  %v564_v35 = vsel %vm2125_vm13, 0.0, %v534_v36  ;;  %v541_v34 = vsel %vm2421_vm3, %v532_v13, %v525_v28  ;;  %vm2425_vm10 = vmmov %vm2421_vm3  ;;  %v522_v6 = vsel %vm2134_vm14, 0.0, %v495_v40 }
 0x11d   :  { %v565_v59 = vsel %vm2145_vm15, 0.0, %v541_v34 }
 0x129   :  { %v1688_v42 = vpop.f32.mrf.mxu0 }
 0x12a   :  { %v657_v51 = vadd.f32 %v1688_v42, %v519_v48 }
 0x12b   :  { %v648_v54 = vpop.f32.mrf.mxu0 }
 0x12c   :  { %v649_v62 = vadd.f32 %v648_v54, %v517_v53  ;;  %v681_v16 = vadd.f32 %v657_v51, %v560_v4  ;;  %v1543_v53 = vld [vmem:[%s2382_s5] ss:$0 sm:$0xff] }
 0x12d   :  { %v1689_v2 = vpop.f32.mrf.mxu0 }
 0x12e   :  { %v679_v8 = vadd.f32 %v649_v62, %v558_v5  ;;  %v660_v12 = vadd.f32 %v1689_v2, %v520_v57  ;;  %v696_v48 = vadd.f32 %v1517_v24, %v681_v16  ;;  %v562_v57 = vsel %vm2159_vm6, 0.0, %v536_v17 }
 0x12f   :  { %v651_v23 = vpop.f32.mrf.mxu0  ;;  %v535_v5 = vsel %vm2425_vm10, %v530_v11, %v531_v3  ;;  %vm2426_vm10 = vmmov %vm2421_vm3 }
 0x130   :  { %v682_v26 = vadd.f32 %v660_v12, %v561_v20  ;;  %v652_v27 = vadd.f32 %v651_v23, %v518_v22  ;;  %v694_v41 = vadd.f32 %v1517_v24, %v679_v8  ;;  %v704_v47 = vmax.f32 %v696_v48, 0.0  ;;  %v1821_v20 = vld [vmem:[#allocation7 + $0x70] sm:$0xff]  }
 0x131   :  { %v1692_v37 = vpop.f32.mrf.mxu0  ;;  %v563_v16 = vsel %vm2181_vm7, 0.0, %v535_v5 }
 0x132   :  { %v697_v55 = vadd.f32 %v1517_v24, %v682_v26  ;;  %v680_v42 = vadd.f32 %v652_v27, %v559_v31  ;;  %v673_v49 = vadd.f32 %v1692_v37, %v523_v33  ;;  %v702_v63 = vmax.f32 %v694_v41, 0.0  ;;  %v1823_v41 = vld [vmem:[#allocation7 + $0x60] sm:$0xff]  }
 0x133   :  { %v664_v51 = vpop.f32.mrf.mxu0 }
 0x134   :  { %v695_v9 = vadd.f32 %v1517_v24, %v680_v42  ;;  %v665_v54 = vadd.f32 %v664_v51, %v521_v50  ;;  %v705_v56 = vmax.f32 %v697_v55, 0.0  ;;  %v685_v61 = vadd.f32 %v673_v49, %v564_v35  ;;  %v1826_v55 = vld [vmem:[#allocation7 + $0x48] sm:$0xff]   ;;  %v1827_v42 = vld [vmem:[#allocation7 + $0x40] sm:$0xff]  }
 0x135   :  { %v1693_v62 = vpop.f32.mrf.mxu0 }
 0x136   :  { %v703_v0 = vmax.f32 %v695_v9, 0.0  ;;  %v683_v4 = vadd.f32 %v665_v54, %v562_v57  ;;  %v676_v2 = vadd.f32 %v1693_v62, %v524_v18  ;;  %v711_v28 = vpack.c.bf16 %v705_v56, %v704_v47 }
 0x137   :  { %v667_v8 = vpop.f32.mrf.mxu0  ;;  %v700_v11 = vadd.f32 %v1517_v24, %v685_v61 }
 0x138   :  { %v668_v12 = vadd.f32 %v667_v8, %v522_v6  ;;  %v710_v10 = vpack.c.bf16 %v703_v0, %v702_v63  ;;  %v686_v13 = vadd.f32 %v676_v2, %v565_v59  ;;  %v698_v22 = vadd.f32 %v1517_v24, %v683_v4 }
 0x139   :  { %v708_v36 = vmax.f32 %v700_v11, 0.0 }
 0x13a   :  { %v684_v3 = vadd.f32 %v668_v12, %v563_v16  ;;  %1710 = vmatprep.mubr.bf16.mxu1 %v710_v10  ;;  %1734 = vmatprep.mubr.bf16.mxu0 %v710_v10  ;;  %v701_v23 = vadd.f32 %v1517_v24, %v686_v13  ;;  %v706_v31 = vmax.f32 %v698_v22, 0.0 }
 0x13b   :  { %1711 = vmatmul.mubr.bf16.vlgmr.msra.gmra.mxu1 %v711_v28  ;;  %1735 = vmatmul.mubr.bf16.vlgmr.msra.gmra.mxu0 %v711_v28 }
 0x13c   :  { %v699_v26 = vadd.f32 %v1517_v24, %v684_v3  ;;  %1743 = vmatpush3.bf16.msra.mxu1 %v1999_v52  ;;  %v709_v27 = vmax.f32 %v701_v23, 0.0  ;;  %v1824_v24 = vld [vmem:[#allocation7 + $0x58] sm:$0xff]   ;;  %v1825_v52 = vld [vmem:[#allocation7 + $0x50] sm:$0xff]  }
 0x13d   :  { %1744 = vmatprep.subr.bf16.mxu1 %v1821_v20 }
 0x13e   :  { %v707_v33 = vmax.f32 %v699_v26, 0.0  ;;  %v713_v21 = vpack.c.bf16 %v709_v27, %v708_v36 }
 0x140   :  { %1745 = vmatpush3.bf16.msra.mxu1 %v1821_v20  ;;  %v712_v37 = vpack.c.bf16 %v707_v33, %v706_v31 }
 0x141   :  { %1746 = vmatprep.subr.bf16.mxu1 %v1822_v30 }
 0x142   :  { %1714 = vmatprep.mubr.bf16.mxu1 %v712_v37  ;;  %1738 = vmatprep.mubr.bf16.mxu0 %v712_v37 }
 0x143   :  { %1715 = vmatmul.mubr.bf16.gmra.mxu1 %v713_v21  ;;  %1739 = vmatmul.mubr.bf16.gmra.mxu0 %v713_v21 }
 0x144   :  { %1747 = vmatpush3.bf16.msra.mxu1 %v1822_v30  ;;  %1758 = vmatprep.mubr.bf16.mxu1 %v710_v10 }
 0x145   :  { %1748 = vmatprep.subr.bf16.mxu1 %v1823_v41 }
 0x148   :  { %1749 = vmatpush3.bf16.msra.mxu1 %v1823_v41 }
 0x149   :  { %1750 = vmatprep.subr.bf16.mxu1 %v1824_v24 }
 0x14c   :  { %1751 = vmatpush3.bf16.msra.mxu1 %v1824_v24 }
 0x14d   :  { %1752 = vmatprep.subr.bf16.mxu1 %v1825_v52 }
 0x150   :  { %1753 = vmatpush3.bf16.msra.mxu1 %v1825_v52 }
 0x151   :  { %1754 = vmatprep.subr.bf16.mxu1 %v1826_v55 }
 0x154   :  { %1755 = vmatpush3.bf16.msra.mxu1 %v1826_v55 }
 0x155   :  { %1756 = vmatprep.subr.bf16.mxu1 %v1827_v42 }
 0x158   :  { %1757 = vmatpush3.bf16.msra.mxu1 %v1827_v42 }
 0x15b   :  { %1759 = vmatmul.mubr.bf16.vlgmr.msra.gmra.mxu1 %v711_v28 }
 0x15c   :  { %1762 = vmatprep.mubr.bf16.mxu1 %v712_v37 }
 0x163   :  { %1763 = vmatmul.mubr.bf16.gmra.mxu1 %v713_v21 }
 0x1fb   :  { %v1712_v17 = vpop.f32.mrf.mxu1  ;;  %v1736_v49 = vpop.f32.mrf.mxu0 }
 0x1fc   :  { %v992_v4 = vrot.slane %v1712_v17, 7  ;;  %v1016_v5 = vrot.slane %v1736_v49, 1 }
 0x1fd   :  { %v812_v48 = vpop.f32.mrf.mxu1  ;;  %v2206_v51 = vpop.f32.mrf.mxu0 }
 0x1fe   :  { %v990_v61 = vrot.slane %v812_v48, 7  ;;  %v1014_v28 = vrot.slane %v2206_v51, 1 }
 0x1ff   :  { %v1713_v50 = vpop.f32.mrf.mxu1  ;;  %v1737_v54 = vpop.f32.mrf.mxu0 }
 0x200   :  { %v1017_v34 = vrot.slane %v1737_v54, 1  ;;  %v993_v0 = vrot.slane %v1713_v50, 7 }
 0x201   :  { %v815_v9 = vpop.f32.mrf.mxu1  ;;  %v962_v40 = vpop.f32.mrf.mxu0 }
 0x202   :  { %v991_v62 = vrot.slane %v815_v9, 7  ;;  %v1015_v2 = vrot.slane %v962_v40, 1  ;;  %v1026_v59 = vsel %vm2421_vm3, %v1016_v5, %v1017_v34  ;;  %v1002_v10 = vsel %vm492_vm0, %v992_v4, %v993_v0 }
 0x203   :  { %v1716_v18 = vpop.f32.mrf.mxu1  ;;  %v2210_v35 = vpop.f32.mrf.mxu0  ;;  %v1032_v11 = vsel %vm2068_vm5, 0.0, %v1026_v59  ;;  %v1009_v33 = vsel %vm2041_vm2, 0.0, %v1002_v10 }
 0x204   :  { %v1003_v8 = vsel %vm492_vm0, %v991_v62, %v992_v4  ;;  %v1028_v31 = vsel %vm2426_vm10, %v1014_v28, %v1015_v2  ;;  %v996_v36 = vrot.slane %v1716_v18, 7  ;;  %v1020_v37 = vrot.slane %v2210_v35, 1 }
 0x205   :  { %v2208_v56 = vpop.f32.mrf.mxu1  ;;  %v975_v63 = vpop.f32.mrf.mxu0  ;;  %v1008_v3 = vsel %vm2037_vm1, 0.0, %v1003_v8  ;;  %v1004_v41 = vsel %vm492_vm0, %v990_v61, %v991_v62  ;;  %vm2427_vm1 = vmmov %vm2421_vm3  ;;  %v1030_v17 = vsel %vm2096_vm9, 0.0, %v1028_v31  ;;  %vm2431_vm9 = vnez %v2396_v19 }
 0x206   :  { %v1018_v13 = vrot.slane %v975_v63, 1  ;;  %v994_v20 = vrot.slane %v2208_v56, 7  ;;  %vm2428_vm2 = vmmov %vm2427_vm1  ;;  %v1007_v43 = vsel %vm2431_vm9, 0.0, %v1004_v41  ;;  %vm2433_vm10 = vnez %v2402_v38 }
 0x207   :  { %v1717_v57 = vpop.f32.mrf.mxu1  ;;  %v1741_v6 = vpop.f32.mrf.mxu0  ;;  %v1027_v55 = vsel %vm2428_vm2, %v1015_v2, %v1016_v5  ;;  %vm2429_vm5 = vmmov %vm2427_vm1 }
 0x208   :  { %v997_v47 = vrot.slane %v1717_v57, 7  ;;  %v1021_v22 = vrot.slane %v1741_v6, 1  ;;  %v1025_v15 = vsel %vm2427_vm1, %v1017_v34, %v1018_v13  ;;  %v1001_v49 = vsel %vm492_vm0, %v993_v0, %v994_v20  ;;  %vm2432_vm3 = vmmov %vm2427_vm1 }
 0x209   :  { %v2216_v12 = vpop.f32.mrf.mxu1  ;;  %v978_v27 = vpop.f32.mrf.mxu0  ;;  %v1031_v40 = vsel %vm2104_vm11, 0.0, %v1027_v55  ;;  %v1010_v4 = vsel %vm2089_vm8, 0.0, %v1001_v49  ;;  %vm2434_vm11 = vmmov %vm2427_vm1  ;;  %vm1253_vm8 = vcmask 1044484  }
 0x20a   :  { %v1005_v16 = vsel %vm492_vm0, %v997_v47, %v990_v61  ;;  %v995_v26 = vrot.slane %v2216_v12, 7  ;;  %v1019_v42 = vrot.slane %v978_v27, 1  ;;  %v1022_v25 = vsel %vm2429_vm5, %v1020_v37, %v1021_v22 }
 0x20b   :  { %v1006_v32 = vsel %vm2058_vm4, 0.0, %v1005_v16  ;;  %vm2430_vm4 = vnez %v2408_v44  ;;  %v998_v35 = vsel %vm492_vm0, %v996_v36, %v997_v47  ;;  %v1036_v45 = vsel %vm2125_vm13, 0.0, %v1022_v25  ;;  %vm2435_vm13 = vmmov %vm2427_vm1 }
 0x20c   :  { %v999_v54 = vsel %vm492_vm0, %v995_v26, %v996_v36  ;;  %v1033_v18 = vsel %vm2430_vm4, 0.0, %v1025_v15  ;;  %v1024_v44 = vsel %vm2432_vm3, %v1018_v13, %v1019_v42  ;;  %v1023_v6 = vsel %vm2434_vm11, %v1019_v42, %v1020_v37 }
 0x20d   :  { %v1012_v19 = vsel %vm2433_vm10, 0.0, %v999_v54  ;;  %v1013_v58 = vsel %vm2108_vm12, 0.0, %v998_v35  ;;  %v1029_v39 = vsel %vm2435_vm13, %v1021_v22, %v1014_v28  ;;  %v1000_v46 = vsel %vm492_vm0, %v994_v20, %v995_v26  ;;  %v2327_v35 = vld [vmem:[%s2382_s5 + $0x1] ss:$0 sm:$0xff] }
 0x20e   :  { %v1037_v36 = vsel %vm2145_vm15, 0.0, %v1029_v39  ;;  %v1011_v20 = vsel %vm2134_vm14, 0.0, %v1000_v46  ;;  %vm1244_vm0 = vcmask 1041409   ;;  %vm1256_vm12 = vcmask 1045509  }
 0x20f   :  { %vm1259_vm14 = vcmask 1046534   ;;  %vm1262_vm15 = vcmask 1047559  }
 0x21b   :  { %v1760_v23 = vpop.f32.mrf.mxu1 }
 0x21c   :  { %v1129_v30 = vadd.f32 %v1760_v23, %v1008_v3  ;;  %v1034_v3 = vsel %vm2159_vm6, 0.0, %v1024_v44  ;;  %vm1247_vm6 = vcmask 1042434  }
 0x21d   :  { %v1120_v21 = vpop.f32.mrf.mxu1 }
 0x21e   :  { %v1153_v24 = vadd.f32 %v1129_v30, %v1032_v11  ;;  %v1121_v52 = vadd.f32 %v1120_v21, %v1006_v32 }
 0x21f   :  { %v1761_v48 = vpop.f32.mrf.mxu1 }
 0x220   :  { %v2254_v50 = vadd.f32 %v2237_v14, %v1153_v24  ;;  %v1151_v51 = vadd.f32 %v1121_v52, %v1030_v17  ;;  %v1132_v9 = vadd.f32 %v1761_v48, %v1009_v33  ;;  %v1035_v17 = vsel %vm2181_vm7, 0.0, %v1023_v6 }
 0x221   :  { %v1123_v56 = vpop.f32.mrf.mxu1  ;;  %vm1250_vm7 = vcmask 1043459  }
 0x222   :  { %v1186_v57 = vrot.slane %v2254_v50, 4  ;;  %v2268_v34 = vadd.f32 %v2237_v14, %v1151_v51  ;;  %v1154_v62 = vadd.f32 %v1132_v9, %v1033_v18  ;;  %v1124_v63 = vadd.f32 %v1123_v56, %v1007_v43 }
 0x223   :  { %v1764_v0 = vpop.f32.mrf.mxu1 }
 0x224   :  { %v1187_v5 = vadd.f32 %v1186_v57, %v2254_v50  ;;  %v1174_v47 = vrot.slane %v2268_v34, 4  ;;  %v2281_v61 = vadd.f32 %v2237_v14, %v1154_v62  ;;  %v1152_v2 = vadd.f32 %v1124_v63, %v1031_v40 }
 0x225   :  { %v1145_v38 = vadd.f32 %v1764_v0, %v1012_v19  ;;  %v1136_v8 = vpop.f32.mrf.mxu1 }
 0x226   :  { %v1188_v59 = vrot.slane %v1187_v5, 2  ;;  %v1175_v12 = vadd.f32 %v1174_v47, %v2268_v34  ;;  %v1192_v10 = vrot.slane %v2281_v61, 4  ;;  %v2292_v13 = vadd.f32 %v2237_v14, %v1152_v2 }
 0x227   :  { %v1157_v16 = vadd.f32 %v1145_v38, %v1036_v45  ;;  %v1137_v11 = vadd.f32 %v1136_v8, %v1010_v4  ;;  %v1765_v23 = vpop.f32.mrf.mxu1 }
 0x228   :  { %v1189_v27 = vadd.f32 %v1188_v59, %v1187_v5  ;;  %v1176_v30 = vrot.slane %v1175_v12, 2  ;;  %v1193_v28 = vadd.f32 %v1192_v10, %v2281_v61  ;;  %v1180_v22 = vrot.slane %v2292_v13, 4 }
 0x229   :  { %v2301_v31 = vadd.f32 %v2237_v14, %v1157_v16  ;;  %v1155_v33 = vadd.f32 %v1137_v11, %v1034_v3  ;;  %v1148_v29 = vadd.f32 %v1765_v23, %v1013_v58  ;;  %v1139_v37 = vpop.f32.mrf.mxu1 }
 0x22a   :  { %v1177_v32 = vadd.f32 %v1176_v30, %v1175_v12  ;;  %v1194_v21 = vrot.slane %v1193_v28, 2  ;;  %v1181_v41 = vadd.f32 %v1180_v22, %v2292_v13  ;;  %v1140_v15 = vadd.f32 %v1139_v37, %v1011_v20 }
 0x22b   :  { %v1210_v26 = vrot.slane %v2301_v31, 4  ;;  %v2310_v24 = vadd.f32 %v2237_v14, %v1155_v33  ;;  %v1158_v52 = vadd.f32 %v1148_v29, %v1037_v36  ;;  %v1190_v55 = vrot.slane %v1189_v27, 1 }
 0x22c   :  { %v1195_v42 = vadd.f32 %v1194_v21, %v1193_v28  ;;  %v1182_v7 = vrot.slane %v1181_v41, 2  ;;  %v1156_v49 = vadd.f32 %v1140_v15, %v1035_v17  ;;  %v1178_v51 = vrot.slane %v1177_v32, 1 }
 0x22d   :  { %v1211_v48 = vadd.f32 %v1210_v26, %v2301_v31  ;;  %v1198_v25 = vrot.slane %v2310_v24, 4  ;;  %v2317_v1 = vadd.f32 %v2237_v14, %v1158_v52  ;;  %v1191_v40 = vadd.f32 %v1190_v55, %v1189_v27 }
 0x22e   :  { %v1183_v9 = vadd.f32 %v1182_v7, %v1181_v41  ;;  %v1196_v56 = vrot.slane %v1195_v42, 1  ;;  %v2331_v44 = vadd.f32 %v2237_v14, %v1156_v49  ;;  %v1179_v19 = vadd.f32 %v1178_v51, %v1177_v32 }
 0x22f   :  { %v1212_v54 = vrot.slane %v1211_v48, 2  ;;  %v1199_v18 = vadd.f32 %v1198_v25, %v2310_v24  ;;  %v1216_v43 = vrot.slane %v2317_v1, 4  ;;  %v1229_v2 = vmul.f32 %v1543_v53, %v1191_v40 }
 0x230   :  { %v1184_v57 = vrot.slane %v1183_v9, 1  ;;  %v1204_v5 = vrot.slane %v2331_v44, 4  ;;  %v1283_v6 = vmul.f32 %v2327_v35, %v1191_v40  ;;  %v1197_v38 = vadd.f32 %v1196_v56, %v1195_v42 }
 0x231   :  { %v1200_v62 = vrot.slane %v1199_v18, 2  ;;  %v1217_v63 = vadd.f32 %v1216_v43, %v2317_v1  ;;  %v1213_v45 = vadd.f32 %v1212_v54, %v1211_v48  ;;  %v1227_v14 = vmul.f32 %v1543_v53, %v1179_v19 }
 0x232   :  { %v1185_v0 = vadd.f32 %v1184_v57, %v1183_v9  ;;  %v1205_v59 = vadd.f32 %v1204_v5, %v2331_v44  ;;  %v1299_v46 = vrot.slane %v1283_v6, 6  ;;  %v1281_v27 = vmul.f32 %v2327_v35, %v1179_v19 }
 0x233   :  { %v1201_v4 = vadd.f32 %v1200_v62, %v1199_v18  ;;  %v1218_v47 = vrot.slane %v1217_v63, 2  ;;  %v1214_v12 = vrot.slane %v1213_v45, 1  ;;  %v1230_v28 = vmul.f32 %v1543_v53, %v1197_v38 }
 0x234   :  { %v1228_v8 = vmul.f32 %v1543_v53, %v1185_v0  ;;  %v1282_v58 = vmul.f32 %v2327_v35, %v1185_v0  ;;  %v1206_v23 = vrot.slane %v1205_v59, 2  ;;  %v1246_v36 = vrot.slane %v1229_v2, 6 }
 0x235   :  { %v1202_v39 = vrot.slane %v1201_v4, 1  ;;  %v1219_v10 = vadd.f32 %v1218_v47, %v1217_v63  ;;  %v1284_v29 = vmul.f32 %v2327_v35, %v1197_v38  ;;  %v1215_v37 = vadd.f32 %v1214_v12, %v1213_v45 }
 0x236   :  { %v1243_v16 = vrot.slane %v1228_v8, 7  ;;  %v1297_v3 = vrot.slane %v1282_v58, 7  ;;  %v1207_v22 = vadd.f32 %v1206_v23, %v1205_v59  ;;  %v1249_v15 = vrot.slane %v1230_v28, 5  ;;  %v1547_v23 = vld [vmem:[%s2384_s7 + $0x1] ss:$0 sm:$0xff] }
 0x237   :  { %v1203_v11 = vadd.f32 %v1202_v39, %v1201_v4  ;;  %v1220_v30 = vrot.slane %v1219_v10, 1  ;;  %v1301_v7 = vrot.slane %v1284_v29, 5  ;;  %v1233_v17 = vmul.f32 %v1543_v53, %v1215_v37  ;;  %v1544_v39 = vld [vmem:[%s2383_s6] ss:$0 sm:$0xff] }
 0x238   :  { %v1245_v33 = vsel %vm1244_vm0, %v1243_v16, %v1227_v14  ;;  %v1298_v41 = vsel %vm1244_vm0, %v1297_v3, %v1281_v27  ;;  %v1208_v20 = vrot.slane %v1207_v22, 1  ;;  %v1287_v43 = vmul.f32 %v2327_v35, %v1215_v37  ;;  %v1548_v28 = vld [vmem:[%s2385_s8] ss:$0 sm:$0xff] }
 0x239   :  { %v1231_v32 = vmul.f32 %v1543_v53, %v1203_v11  ;;  %v1285_v21 = vmul.f32 %v2327_v35, %v1203_v11  ;;  %v1221_v26 = vadd.f32 %v1220_v30, %v1219_v10  ;;  %v1248_v52 = vsel %vm1247_vm6, %v1246_v36, %v1245_v33  ;;  %v1546_v11 = vld [vmem:[%s2384_s7] ss:$0 sm:$0xff]  ;;  %s1936_s7 = smov [#allocation8]  }
 0x23a   :  { %v1300_v55 = vsel %vm1247_vm6, %v1299_v46, %v1298_v41  ;;  %v1209_v42 = vadd.f32 %v1208_v20, %v1207_v22  ;;  %v1251_v48 = vsel %vm1250_vm7, %v1249_v15, %v1248_v52  ;;  %v1258_v62 = vrot.slane %v1233_v17, 2  ;;  %s1480_s8 = sshll.u32 %s1936_s7, 4  ;;  %s1481_s8 = int_to_ptr.vmem [resolvable:$true] %s1480_s8 }
 0x23b   :  { %v1252_v25 = vrot.slane %v1231_v32, 4  ;;  %v1303_v49 = vrot.slane %v1285_v21, 4  ;;  %v1234_v9 = vmul.f32 %v1543_v53, %v1221_v26  ;;  %v1302_v18 = vsel %vm1250_vm7, %v1301_v7, %v1300_v55  ;;  %s1900_s16 = scalar_lea.vmem %s1481_s8, 1024  ;;  %p1905_p2 = scmp.lt.s32.totalorder %s1481_s8, %s1481_s8 }
 0x23c   :  { %v1232_v51 = vmul.f32 %v1543_v53, %v1209_v42  ;;  %v1286_v54 = vmul.f32 %v2327_v35, %v1209_v42  ;;  %v1288_v0 = vmul.f32 %v2327_v35, %v1221_v26  ;;  %v1307_v5 = vrot.slane %v1287_v43, 2  ;;  %p1901_p1 = scmp.ne.s32.totalorder %s1481_s8, %s1900_s16  ;;  %p1906_p3 = scmp.lt.s32.totalorder %s1900_s16, %s1900_s16 }
 0x23d   :  { %v1254_v57 = vsel %vm1253_vm8, %v1252_v25, %v1251_v48  ;;  %v1304_v63 = vsel %vm1253_vm8, %v1303_v49, %v1302_v18  ;;  %v1261_v45 = vrot.slane %v1234_v9, 1  ;;  %v1933_v8 = vmov 0  }
 0x23e   :  { %v1255_v40 = vrot.slane %v1232_v51, 3  ;;  %v1305_v56 = vrot.slane %v1286_v54, 3  ;;  %v1309_v6 = vrot.slane %v1288_v0, 1  ;;  %1777 = vset.pattern.permute.xlu1 %v1933_v8  ;;  %v1934_v58 = vmov 1   ;;  %p1907_p4 = por %p1906_p3, %p1905_p2 }
 0x23f   :  { %1779 = vset.pattern.permute.xlu0 %v1934_v58  ;;  %v1935_v32 = vmov 1966171168   ;;  %v1405_v55 = vsub.s32 0, %v2012_v60 }
 0x240   :  { %v1257_v19 = vsel %vm1256_vm12, %v1255_v40, %v1254_v57  ;;  %v1306_v53 = vsel %vm1256_vm12, %v1305_v56, %v1304_v63  ;;  %v1356_v21 = vunpack.c.l.s4 %v1935_v32  ;;  %p1908_p5 = pnand %p1907_p4, %p1901_p1 }
 0x241   :  { %v1260_v4 = vsel %vm1259_vm14, %v1258_v62, %v1257_v19  ;;  %v1308_v2 = vsel %vm1259_vm14, %v1307_v5, %v1306_v53  ;;  %v1832_v5 = vld [vmem:[#allocation2] sm:$0xff] }
 0x242   :  { %v1263_v47 = vsel %vm1262_vm15, %v1261_v45, %v1260_v4  ;;  %v1310_v38 = vsel %vm1262_vm15, %v1309_v6, %v1308_v2  ;;  %v1357_v41 = vunpack.c.0.s8 %v1356_v21 }
 0x243   :  { %1265 = vadd.xlane.f32.xlu0 %v1263_v47 }
 0x244   :  { %v1360_v20 = vsub.s32 %v1357_v41, %v2012_v60 }
 0x247   :  { %1312 = vadd.xlane.f32.xlu0 %v1310_v38 }
 0x2cc   :  { %v1266_v59 = vpop.xlane.xlu0 %1265 }
 0x2cd   :  { %v1274_v14 = vadd.f32 %v1544_v39, %v1266_v59 }
 0x2cf   :  { %v1275_v35 = vmax.f32 %v1274_v14, 0.0  ;;  %v1835_v14 = vld [vmem:[#allocation2 + $0x20] sm:$0xff] }
 0x2d0   :  { %v1313_v12 = vpop.xlane.xlu0 %1312 }
 0x2d1   :  { %v1314_v10 = vadd.f32 %v1544_v39, %v1313_v12  ;;  %1319 = vperm.xlu1 %1777, %v1275_v35   ;;  %v1834_v39 = vld [vmem:[#allocation2 + $0x10] sm:$0xff]  ;;  %v1836_v12 = vld [vmem:[#allocation2 + $0x18] sm:$0xff] }
 0x2d3   :  { %v1315_v16 = vmax.f32 %v1314_v10, 0.0  ;;  %v1837_v10 = vld [vmem:[#allocation2 + $0x28] sm:$0xff] }
 0x2d5   :  { %1778 = vset.pattern.permute.xlu1 %v1934_v58 }
 0x2d6   :  { %1330 = vperm.xlu1 %1778, %v1315_v16  }
 0x34c   :  { %v1320_v3 = vpop.permute.xlu1 %1319 }
 0x34d   :  { %v1326_v27 = vmul.f32 %v1546_v11, %v1320_v3  ;;  %v1838_v3 = vld [vmem:[#allocation2 + $0x30] sm:$0xff] }
 0x351   :  { %v1331_v46 = vpop.permute.xlu1 %1330 }
 0x352   :  { %v1337_v30 = vmul.f32 %v1547_v23, %v1331_v46 }
 0x354   :  { %v1338_v22 = vadd.f32 %v1337_v30, %v1326_v27 }
 0x356   :  { %v1346_v33 = vadd.f32 %v1548_v28, %v1338_v22 }
 0x358   :  { %v1549_v36 = vmul.f32 -1.442695, %v1346_v33 }
 0x35a   :  { %1828 = vpow2.f32 %v1549_v36 }
 0x367   :  { %v1829_v29 = vpop.eup %1828 }
 0x368   :  { %v1350_v37 = vadd.f32 1.0, %v1829_v29 }
 0x36a   :  { %1830 = vrcp.f32 %v1350_v37 }
 0x377   :  { %v1831_v26 = vpop.eup %1830 }
 0x378   :  { %v1354_v52 = vcombine.high %v1831_v26, %v1831_v26  ;;  %v1361_v15 = vrot.slane %v1831_v26, %v1360_v20 }
 0x37a   :  { %v1368_v42 = vrot.slane %v1354_v52, %v1360_v20  ;;  %v1369_v7 = vcombine.high %v1361_v15, %v1361_v15  ;;  %v1377_v17 = vrot.slane %v1361_v15, %v1360_v20 }
 0x37c   :  { %v1370_v48 = vcombine.high %v1368_v42, %v1368_v42  ;;  %v1384_v25 = vrot.slane %v1368_v42, %v1360_v20  ;;  %v1391_v49 = vrot.slane %v1369_v7, %v1360_v20  ;;  %v1399_v51 = vcombine.high %v1377_v17, %v1377_v17 }
 0x37d   :  { %v1406_v9 = vrot.slane %v1377_v17, %v1405_v55 }
 0x37e   :  { %v1398_v54 = vrot.slane %v1370_v48, %v1360_v20  ;;  %v1400_v18 = vcombine.high %v1384_v25, %v1384_v25  ;;  %v1401_v43 = vcombine.high %v1391_v49, %v1391_v49  ;;  %v1410_v40 = vrot.slane %v1391_v49, %v1405_v55 }
 0x37f   :  { %v1414_v56 = vrot.slane %v1399_v51, %v1405_v55  ;;  %v1422_v57 = vrot.slane %v1384_v25, %v1405_v55  ;;  %v1443_v62 = vmul.f32 %v1406_v9, %v2268_v34  ;;  %v1833_v34 = vld [vmem:[#allocation2 + $0x8] sm:$0xff] }
 0x380   :  { %v1402_v63 = vcombine.high %v1398_v54, %v1398_v54  ;;  %v1418_v19 = vrot.slane %v1401_v43, %v1405_v55  ;;  %v1426_v45 = vrot.slane %v1398_v54, %v1405_v55  ;;  %v1430_v60 = vrot.slane %v1400_v18, %v1405_v55 }
 0x381   :  { %v1444_v0 = vmul.f32 %v1410_v40, %v2292_v13  ;;  %v1445_v53 = vmul.f32 %v1414_v56, %v2254_v50  ;;  %v1447_v4 = vmul.f32 %v1422_v57, %v2310_v24  ;;  %v1451_v47 = vadd.f32 %v1832_v5, %v1443_v62 }
 0x382   :  { %v1434_v2 = vrot.slane %v1402_v63, %v1405_v55  ;;  %v1446_v6 = vmul.f32 %v1418_v19, %v2281_v61  ;;  %v1448_v38 = vmul.f32 %v1426_v45, %v2331_v44  ;;  %v1449_v8 = vmul.f32 %v1430_v60, %v2301_v31  ;;  %v1839_v31 = vld [vmem:[#allocation2 + $0x38] sm:$0xff] }
 0x383   :  { %v1452_v58 = vadd.f32 %v1833_v34, %v1444_v0  ;;  %v1453_v59 = vadd.f32 %v1834_v39, %v1445_v53  ;;  %v1455_v35 = vadd.f32 %v1835_v14, %v1447_v4  ;;  %v1459_v13 = vmax.f32 %v1451_v47, 0.0 }
 0x384   :  { %v1450_v50 = vmul.f32 %v1434_v2, %v2317_v1  ;;  %v1454_v24 = vadd.f32 %v1836_v12, %v1446_v6  ;;  %v1456_v16 = vadd.f32 %v1837_v10, %v1448_v38  ;;  %v1457_v11 = vadd.f32 %v1838_v3, %v1449_v8 }
 0x385   :  { %v1460_v61 = vmax.f32 %v1452_v58, 0.0  ;;  %v1461_v23 = vmax.f32 %v1453_v59, 0.0  ;;  %v1463_v44 = vmax.f32 %v1455_v35, 0.0  ;;  %1467 = vst [vmem:[#allocation8] sm:$0xff] %v1459_v13 }
 0x386   :  { %v1458_v46 = vadd.f32 %v1839_v31, %v1450_v50  ;;  %v1462_v27 = vmax.f32 %v1454_v24, 0.0  ;;  %v1464_v30 = vmax.f32 %v1456_v16, 0.0  ;;  %v1465_v28 = vmax.f32 %v1457_v11, 0.0 }
 0x387   :  { %1468 = vst [vmem:[#allocation8 + $0x8] sm:$0xff] %v1460_v61  ;;  %1469 = vst [vmem:[#allocation8 + $0x10] sm:$0xff] %v1461_v23 }
 0x388   :  { %1471 = vst [vmem:[#allocation8 + $0x20] sm:$0xff] %v1463_v44  ;;  %v1466_v1 = vmax.f32 %v1458_v46, 0.0  ;;  %1470 = vst [vmem:[#allocation8 + $0x18] sm:$0xff] %v1462_v27 }
 0x389   :  { %1472 = vst [vmem:[#allocation8 + $0x28] sm:$0xff] %v1464_v30  ;;  %1473 = vst [vmem:[#allocation8 + $0x30] sm:$0xff] %v1465_v28 }
 0x38a   :  { %1474 = vst [vmem:[#allocation8 + $0x38] sm:$0xff] %v1466_v1 }
 0x38b   :  { %1911 = shalt.err (!%p1908_p5)
}
 0x38c   :  { %1486 = dma.vmem_to_hbm [thread:$0]  %s1481_s8, 1024, %s2386_s9, [#allocation4], %s1930_s19, %s1930_s19, %s1931_s20  }
 0x38d   :  { %1924 = dma.done.wait [#allocation4], 1024  }
 0x38e   :  { %1925 = vsyncadd [#allocation4], 4294966272 }
 0x38f   :  { %1490 = vsyncpa [#allocation3], 1 }
 0x390   :  { %1491 = vsyncpa [#allocation6], 1 }
 0x391   :  { %1492 = vsyncpa [#allocation4], 1 }

</bundles_post_ra>
